<compile_context>
chip_gen: v7x
topology: tpu7x:2x2x1
jax: 0.10.0
libtpu: 0.0.40
codegen_flags: <defaults>
</compile_context>

<pallas_src>
import functools

import jax
import jax.numpy as jnp
from jax import lax
from jax.experimental import pallas as pl
from jax.experimental.pallas import tpu as pltpu


def _round_up(n, m):
    return (n + m - 1) // m * m


def _cdiv(n, m):
    return (n + m - 1) // m


def _plan(num_items, tile_items, encoder_splits):
    """Item-axis tiling plan shared by prepare_params() and cdae_forward()."""
    T = _round_up(min(tile_items, _round_up(num_items, 128)), 128)
    n_tiles = _cdiv(num_items, T)
    S = encoder_splits if (encoder_splits > 1 and n_tiles >= encoder_splits) else 1
    K = _cdiv(n_tiles, S)                 # encoder item tiles per split
    items_padded = S * K * T
    return T, S, K, items_padded


def default_encoder_splits():
    """2 on megacore (v7x-class) parts, 1 elsewhere.  Heuristic; safe either way."""
    try:
        kind = jax.devices()[0].device_kind.lower()
    except Exception:
        return 1
    return 2 if ("v7" in kind or "7x" in kind) else 1


def _vmem_budget(bytes_needed):
    # Right-sized scoped-VMEM request; cap at 32 MiB (v7x has 64 MiB physical).
    return int(min(max(bytes_needed + (2 << 20), 8 << 20), 32 << 20))


# ---------------- Pass 1: encoder partial sums --------------------------------
def _encoder_kernel(x_ref, enc_wt_ref, hpart_ref):
    """hpart[s] += x_tile @ enc_w_tile^T, reduced over this split's item tiles."""
    @pl.when(pl.program_id(2) == 0)
    def _():
        hpart_ref[...] = jnp.zeros_like(hpart_ref)

    # x_ref: [TB, T] bf16, enc_wt_ref: [H, T] bf16 (lane-dense). Contract T.
    hpart_ref[...] += lax.dot_general(
        x_ref[...], enc_wt_ref[...],
        dimension_numbers=(((1,), (1,)), ((), ())),
        preferred_element_type=jnp.float32)


# ---------------- Pass 2: decoder ----------------------------------------------
def _decoder_kernel(h_ref, dec_w_ref, dec_b_ref, out_ref):
    """out_tile = sigmoid(h @ dec_w_tile + dec_b_tile)."""
    logits = jnp.dot(h_ref[...], dec_w_ref[...],
                     preferred_element_type=jnp.float32)
    out_ref[...] = jax.nn.sigmoid(logits + dec_b_ref[...]).astype(out_ref.dtype)


def prepare_params(enc_w, enc_b, dec_w, dec_b, user_emb, *,
                   tile_items=8192, encoder_splits=1):
    """One-time weight preprocessing (transpose + pad + bf16 cast).

    Call once and reuse across forward calls so the hot path carries no
    full-weight convert/pad HBM traffic.
    """
    num_items, _ = enc_w.shape
    _, _, _, items_padded = _plan(num_items, tile_items, encoder_splits)
    pad_i = items_padded - num_items
    enc_wt = jnp.pad(jnp.asarray(enc_w).T.astype(jnp.bfloat16),
                     ((0, 0), (0, pad_i)))
    dec_wp = jnp.pad(jnp.asarray(dec_w).astype(jnp.bfloat16),
                     ((0, 0), (0, pad_i)))
    dec_bp = jnp.pad(jnp.asarray(dec_b).astype(jnp.float32),
                     (0, pad_i)).reshape(1, items_padded)
    return {
        "enc_wt": enc_wt,                                       # [H, I_pad] bf16
        "enc_b": jnp.asarray(enc_b).astype(jnp.float32),        # [H]      f32
        "dec_w": dec_wp,                                        # [H, I_pad] bf16
        "dec_b": dec_bp,                                        # [1, I_pad] f32
        "user_emb": jnp.asarray(user_emb).astype(jnp.float32),  # [U, H]   f32
    }


@functools.partial(jax.jit, static_argnames=("tile_items", "encoder_splits",
                                             "batch_tile", "out_dtype"))
def cdae_forward(u, x, params, *, tile_items=8192, encoder_splits=1,
                 batch_tile=256, out_dtype=jnp.bfloat16):
    B, I = x.shape
    H = params["enc_b"].shape[0]
    I_pad = params["dec_b"].shape[1]
    T, S, K, I_pad_plan = _plan(I, tile_items, encoder_splits)
    assert I_pad_plan == I_pad, (
        "params were prepared with different (tile_items, encoder_splits)")
    n_item_tiles = I_pad // T

    # Batch tiling keeps the per-step VMEM footprint bounded for large batches.
    B8 = _round_up(B, 8)
    NB = _cdiv(B8, batch_tile)
    TB = _round_up(_cdiv(B8, NB), 8)
    B_pad = TB * NB

    # Only per-call input preprocessing left in the hot path (pad+cast of x
    # fuses into one XLA op; weights were prepared once, offline).
    x_bf = x.astype(jnp.bfloat16)
    if B_pad != B or I_pad != I:
        x_bf = jnp.pad(x_bf, ((0, B_pad - B), (0, I_pad - I)))

    ue = params["user_emb"][u]                     # [B, H] gather (JAX glue)
    if B_pad != B:
        ue = jnp.pad(ue, ((0, B_pad - B), (0, 0)))

    # ---- Pass 1: encoder — stream x and enc_w^T exactly once -----------------
    enc_vmem = _vmem_budget(2 * 2 * (TB * T + H * T) + 2 * TB * H * 4)
    hpart = pl.pallas_call(
        _encoder_kernel,
        out_shape=jax.ShapeDtypeStruct((S, B_pad, H), jnp.float32),
        grid_spec=pltpu.PrefetchScalarGridSpec(
            num_scalar_prefetch=0,
            grid=(S, NB, K),
            in_specs=[
                pl.BlockSpec((TB, T), lambda s, b, k: (b, s * K + k)),  # x tile
                pl.BlockSpec((H, T), lambda s, b, k: (0, s * K + k)),   # enc_w^T
            ],
            out_specs=pl.BlockSpec((None, TB, H),
                                   lambda s, b, k: (s, b, 0)),  # resident partial
        ),
        compiler_params=pltpu.CompilerParams(
            dimension_semantics=("parallel", "parallel", "arbitrary"),
            vmem_limit_bytes=enc_vmem),
    )(x_bf, params["enc_wt"])

    # Tiny epilogue fused with the embedding gather: combine split partials,
    # add bias + user embedding, sigmoid, emit bf16 h for the decoder.
    h = jax.nn.sigmoid(jnp.sum(hpart, axis=0) + params["enc_b"][None, :] + ue)
    h = h.astype(jnp.bfloat16)

    # ---- Pass 2: decoder — h resident, dec_w streamed once, bf16 output ------
    out_isize = jnp.dtype(out_dtype).itemsize
    dec_vmem = _vmem_budget(2 * (H * T * 2 + T * 4 + TB * T * out_isize)
                            + TB * H * 2)
    out = pl.pallas_call(
        _decoder_kernel,
        out_shape=jax.ShapeDtypeStruct((B_pad, I_pad), out_dtype),
        grid_spec=pltpu.PrefetchScalarGridSpec(
            num_scalar_prefetch=0,
            grid=(n_item_tiles, NB),        # item axis outer: dec_w DMA'd once
            in_specs=[
                pl.BlockSpec((TB, H), lambda j, b: (b, 0)),   # h (resident/tiny)
                pl.BlockSpec((H, T), lambda j, b: (0, j)),    # dec_w tile
                pl.BlockSpec((1, T), lambda j, b: (0, j)),    # dec_b tile
            ],
            out_specs=pl.BlockSpec((TB, T), lambda j, b: (b, j)),
        ),
        compiler_params=pltpu.CompilerParams(
            dimension_semantics=("parallel", "parallel"),
            vmem_limit_bytes=dec_vmem),
    )(h, params["dec_w"], params["dec_b"])

    return out[:B, :I]


def _xavier_uniform(key, shape, dtype=jnp.float32):
    fan_in, fan_out = shape
    a = (6.0 / (fan_in + fan_out)) ** 0.5
    return jax.random.uniform(key, shape, dtype, minval=-a, maxval=a)


if __name__ == "__main__":
    # Small synthetic sizes consistent with the module:
    num_users, num_items, hidden_dim, batch = 16, 256, 32, 8

    key = jax.random.PRNGKey(0)
    k_encw, k_encb, k_decw, k_decb, k_emb, k_x, k_u = jax.random.split(key, 7)

    # Deterministic parameter init mirroring build_graph():
    enc_w = _xavier_uniform(k_encw, (num_items, hidden_dim))
    enc_b = 0.001 * jax.random.normal(k_encb, (hidden_dim,), jnp.float32)
    dec_w = _xavier_uniform(k_decw, (hidden_dim, num_items))
    dec_b = 0.001 * jax.random.normal(k_decb, (num_items,), jnp.float32)
    user_emb = jax.random.normal(k_emb, (num_users, hidden_dim), jnp.float32)

    # Inputs: implicit-feedback rows (0/1) and user indices.
    x = (jax.random.uniform(k_x, (batch, num_items)) < 0.1).astype(jnp.float32)
    u = jax.random.randint(k_u, (batch,), 0, num_users)

    splits = default_encoder_splits()           # 2 on v7x-class chips, else 1
    params = prepare_params(enc_w, enc_b, dec_w, dec_b, user_emb,
                            encoder_splits=splits)
    out = cdae_forward(u, x, params, encoder_splits=splits)
    out = jax.block_until_ready(out)

    # Reference in plain JAX (same bf16 casts on streamed operands,
    # f32 accumulation / epilogue). Output itself is bf16 -> atol 1e-2.
    xb = x.astype(jnp.bfloat16).astype(jnp.float32)
    ewb = enc_w.astype(jnp.bfloat16).astype(jnp.float32)
    dwb = dec_w.astype(jnp.bfloat16).astype(jnp.float32)
    h_ref = jax.nn.sigmoid(xb @ ewb + enc_b + user_emb[u])
    hb = h_ref.astype(jnp.bfloat16).astype(jnp.float32)
    out_ref = jax.nn.sigmoid(hb @ dwb + dec_b)

    assert out.shape == (batch, num_items)
    assert out.dtype == jnp.bfloat16
    assert jnp.allclose(out.astype(jnp.float32), out_ref, atol=1e-2), \
        "mismatch vs reference"

    print("KERNEL_OK")
</pallas_src>

<mosaic_0001>
module attributes {stable_mosaic.version = 11 : i64} {
  func.func @_encoder_kernel(%arg0: i32, %arg1: i32, %arg2: i32, %arg3: memref<8x256xbf16, #tpu.memory_space<vmem>>, %arg4: memref<32x256xbf16, #tpu.memory_space<vmem>>, %arg5: memref<1x8x32xf32, #tpu.memory_space<vmem>>) attributes {dimension_semantics = [#tpu.dimension_semantics<parallel>, #tpu.dimension_semantics<parallel>, #tpu.dimension_semantics<arbitrary>], iteration_bounds = array<i64: 1, 1, 1>, scalar_prefetch = 0 : i64, scratch_operands = 0 : i64, tpu.core_type = #tpu.core_type<tc>, window_params = [{transform_indices = @transform_0, window_bounds = array<i64: 8, 256>}, {transform_indices = @transform_1, window_bounds = array<i64: 32, 256>}, {transform_indices = @transform_2, window_bounds = array<i64: 1, 8, 32>}]} {
    %c0_i32 = arith.constant 0 : i32
    %0 = arith.cmpi eq, %arg2, %c0_i32 : i32
    %1 = arith.extui %0 : i1 to i32
    %c0_i32_0 = arith.constant 0 : i32
    %2 = arith.cmpi ne, %1, %c0_i32_0 : i32
    scf.if %2 {
      %cst_10 = arith.constant 0.000000e+00 : f32
      %12 = vector.broadcast %cst_10 : f32 to vector<8x32xf32>
      %c0_11 = arith.constant 0 : index
      %c0_12 = arith.constant 0 : index
      %c0_13 = arith.constant 0 : index
      %13 = vector.load %arg5[%c0_11, %c0_12, %c0_13] : memref<1x8x32xf32, #tpu.memory_space<vmem>>, vector<1x8x32xf32>
      %14 = vector.shape_cast %13 : vector<1x8x32xf32> to vector<8x32xf32>
      %15 = vector.shape_cast %12 : vector<8x32xf32> to vector<1x8x32xf32>
      tpu.vector_store %arg5[%c0_11, %c0_12, %c0_13], %15 {strides = array<i32>} : memref<1x8x32xf32, #tpu.memory_space<vmem>>, vector<1x8x32xf32>,
    } else {
    }
    %c0 = arith.constant 0 : index
    %c0_1 = arith.constant 0 : index
    %c0_2 = arith.constant 0 : index
    %3 = vector.load %arg5[%c0, %c0_1, %c0_2] : memref<1x8x32xf32, #tpu.memory_space<vmem>>, vector<1x8x32xf32>
    %4 = vector.shape_cast %3 : vector<1x8x32xf32> to vector<8x32xf32>
    %c0_3 = arith.constant 0 : index
    %c0_4 = arith.constant 0 : index
    %5 = vector.load %arg3[%c0_3, %c0_4] : memref<8x256xbf16, #tpu.memory_space<vmem>>, vector<8x256xbf16>
    %c0_5 = arith.constant 0 : index
    %c0_6 = arith.constant 0 : index
    %6 = vector.load %arg4[%c0_5, %c0_6] : memref<32x256xbf16, #tpu.memory_space<vmem>>, vector<32x256xbf16>
    %cst = arith.constant dense<0.000000e+00> : vector<8x32xf32>
    %7 = tpu.matmul %5, %6, %cst {dimension_numbers = #tpu.dot_dimension_numbers<[1], [1], [0], [0], [0, 0, 1, 0], [], []>} : vector<8x256xbf16>, vector<32x256xbf16>, vector<8x32xf32> -> vector<8x32xf32>
    %8 = arith.addf %4, %7 : vector<8x32xf32>
    %c0_7 = arith.constant 0 : index
    %c0_8 = arith.constant 0 : index
    %c0_9 = arith.constant 0 : index
    %9 = vector.load %arg5[%c0_7, %c0_8, %c0_9] : memref<1x8x32xf32, #tpu.memory_space<vmem>>, vector<1x8x32xf32>
    %10 = vector.shape_cast %9 : vector<1x8x32xf32> to vector<8x32xf32>
    %11 = vector.shape_cast %8 : vector<8x32xf32> to vector<1x8x32xf32>
    tpu.vector_store %arg5[%c0_7, %c0_8, %c0_9], %11 {strides = array<i32>} : memref<1x8x32xf32, #tpu.memory_space<vmem>>, vector<1x8x32xf32>,
    return
  }
  func.func @transform_0(%arg0: i32, %arg1: i32, %arg2: i32) -> (i32, i32) {
    %c1_i32 = arith.constant 1 : i32
    %0 = arith.muli %arg0, %c1_i32 : i32
    %1 = arith.addi %0, %arg2 : i32
    %c0_i32 = arith.constant 0 : i32
    return %arg1, %1 : i32, i32
  }
  func.func @transform_1(%arg0: i32, %arg1: i32, %arg2: i32) -> (i32, i32) {
    %c1_i32 = arith.constant 1 : i32
    %0 = arith.muli %arg0, %c1_i32 : i32
    %1 = arith.addi %0, %arg2 : i32
    %c0_i32 = arith.constant 0 : i32
    %c0_i32_0 = arith.constant 0 : i32
    return %c0_i32, %1 : i32, i32
  }
  func.func @transform_2(%arg0: i32, %arg1: i32, %arg2: i32) -> (i32, i32, i32) {
    %c0_i32 = arith.constant 0 : i32
    %c0_i32_0 = arith.constant 0 : i32
    return %arg0, %arg1, %c0_i32 : i32, i32, i32
  }
}

module attributes {stable_mosaic.version = 11 : i64} {
  func.func @_decoder_kernel(%arg0: i32, %arg1: i32, %arg2: memref<8x32xbf16, #tpu.memory_space<vmem>>, %arg3: memref<32x256xbf16, #tpu.memory_space<vmem>>, %arg4: memref<1x256xf32, #tpu.memory_space<vmem>>, %arg5: memref<8x256xbf16, #tpu.memory_space<vmem>>) attributes {dimension_semantics = [#tpu.dimension_semantics<parallel>, #tpu.dimension_semantics<parallel>], iteration_bounds = array<i64: 1, 1>, scalar_prefetch = 0 : i64, scratch_operands = 0 : i64, tpu.core_type = #tpu.core_type<tc>, window_params = [{transform_indices = @transform_0, window_bounds = array<i64: 8, 32>}, {transform_indices = @transform_1, window_bounds = array<i64: 32, 256>}, {transform_indices = @transform_2, window_bounds = array<i64: 1, 256>}, {transform_indices = @transform_3, window_bounds = array<i64: 8, 256>}]} {
    %c0 = arith.constant 0 : index
    %c0_0 = arith.constant 0 : index
    %0 = vector.load %arg2[%c0, %c0_0] : memref<8x32xbf16, #tpu.memory_space<vmem>>, vector<8x32xbf16>
    %c0_1 = arith.constant 0 : index
    %c0_2 = arith.constant 0 : index
    %1 = vector.load %arg3[%c0_1, %c0_2] : memref<32x256xbf16, #tpu.memory_space<vmem>>, vector<32x256xbf16>
    %cst = arith.constant dense<0.000000e+00> : vector<8x256xf32>
    %2 = tpu.matmul %0, %1, %cst {dimension_numbers = #tpu.dot_dimension_numbers<[1], [0], [0], [1], [0, 0, 1, 1], [], []>} : vector<8x32xbf16>, vector<32x256xbf16>, vector<8x256xf32> -> vector<8x256xf32>
    %c0_3 = arith.constant 0 : index
    %c0_4 = arith.constant 0 : index
    %3 = vector.load %arg4[%c0_3, %c0_4] : memref<1x256xf32, #tpu.memory_space<vmem>>, vector<1x256xf32>
    %4 = vector.broadcast %3 : vector<1x256xf32> to vector<8x256xf32>
    %5 = arith.addf %2, %4 : vector<8x256xf32>
    %6 = arith.negf %5 : vector<8x256xf32>
    %7 = math.exp %6 : vector<8x256xf32>
    %cst_5 = arith.constant 1.000000e+00 : f32
    %8 = vector.broadcast %cst_5 : f32 to vector<8x256xf32>
    %9 = arith.addf %8, %7 : vector<8x256xf32>
    %10 = arith.divf %8, %9 : vector<8x256xf32>
    %11 = arith.truncf %10 : vector<8x256xf32> to vector<8x256xbf16>
    %c0_6 = arith.constant 0 : index
    %c0_7 = arith.constant 0 : index
    %12 = vector.load %arg5[%c0_6, %c0_7] : memref<8x256xbf16, #tpu.memory_space<vmem>>, vector<8x256xbf16>
    tpu.vector_store %arg5[%c0_6, %c0_7], %11 {strides = array<i32>} : memref<8x256xbf16, #tpu.memory_space<vmem>>, vector<8x256xbf16>,
    return
  }
  func.func @transform_0(%arg0: i32, %arg1: i32) -> (i32, i32) {
    %c0_i32 = arith.constant 0 : i32
    %c0_i32_0 = arith.constant 0 : i32
    return %arg1, %c0_i32 : i32, i32
  }
  func.func @transform_1(%arg0: i32, %arg1: i32) -> (i32, i32) {
    %c0_i32 = arith.constant 0 : i32
    %c0_i32_0 = arith.constant 0 : i32
    return %c0_i32, %arg0 : i32, i32
  }
  func.func @transform_2(%arg0: i32, %arg1: i32) -> (i32, i32) {
    %c0_i32 = arith.constant 0 : i32
    %c0_i32_0 = arith.constant 0 : i32
    return %c0_i32, %arg0 : i32, i32
  }
  func.func @transform_3(%arg0: i32, %arg1: i32) -> (i32, i32) {
    %c0_i32 = arith.constant 0 : i32
    return %arg1, %arg0 : i32, i32
  }
}

</mosaic_0001>

<bundles_post_ra>
// kernel: cdae_forward.3
= control target key start
LH: loop header
LB: loop body
LE: loop exit
PB: predicated region body
PF: predicated region fallthrough
CT: control target
= control target key end

     0   :  { %v182_v2 = vmov 0   ;;  %s234_s0 = inlined_call_operand.vmem [shape: bf16[8,32], index: 0, kind: input, shape index: {}]   ;;  %s235_s1 = inlined_call_operand.vmem [shape: bf16[32,256], index: 1, kind: input, shape index: {}]   ;;  %s236_s2 = inlined_call_operand.vmem [shape: f32[1,256], index: 2, kind: input, shape index: {}]   ;;  %s237_s3 = inlined_call_operand.hbm [shape: bf16[8,256], index: 3, kind: output, shape index: {}]  }
   0x1   :  { %v144_v0 = vld [vmem:[%s235_s1 + $0x4] ss:$8 sps:$4 sm:$0xff]   ;;  %v146_v1 = vld [vmem:[%s235_s1] ss:$8 sps:$4 sm:$0xff]   ;;  %89 = vmatprep.mubr.bf16.mxu0 %v182_v2  ;;  %v147_v3 = vld [vmem:[%s235_s1 + $0x14] ss:$8 sps:$4 sm:$0xff]  }
   0x2   :  { %57 = vmatprep.subr.bf16.mxu0 %v144_v0  ;;  %v149_v4 = vld [vmem:[%s235_s1 + $0x10] ss:$8 sps:$4 sm:$0xff]  }
   0x3   :  { %58 = vmatpush1.bf16.msra.mxu0 %v146_v1 }
   0x4   :  { %8 = vsyncpa [#allocation3], 0  ;;  %59 = vmatprep.subr.bf16.mxu0 %v147_v3  ;;  %v16_v5 = vld [vmem:[%s234_s0] sm:$0xf]  ;;  %vm53_vm0 = vcmask 261120   ;;  %v23_v6 = vlaneseq  ;;  %s183_s0 = smov [#allocation2]  }
   0x5   :  { %v21_v9 = vld [vmem:[%s236_s2] sm:$0x3]  ;;  %s125_s1 = sshll.u32 %s183_s0, 4  ;;  %s126_s1 = int_to_ptr.vmem [resolvable:$true] %s125_s1 }
   0x6   :  { %v24_v7 = vshrl.u32 %v23_v6, 7  ;;  %s158_s2 = scalar_lea.vmem %s126_s1, 128  ;;  %p163_p1 = scmp.lt.s32.totalorder %s126_s1, %s126_s1 }
   0x7   :  { %60 = vmatpush1.bf16.msra.mxu0 %v149_v4  ;;  %p159_p0 = scmp.ne.s32.totalorder %s126_s1, %s158_s2  ;;  %p164_p2 = scmp.lt.s32.totalorder %s158_s2, %s158_s2 }
   0x8   :  { %v25_v8 = vsub.s32 0, %v24_v7  ;;  %v29_v10 = vsub.s32 1, %v24_v7 }
   0x9   :  { %p165_p3 = por %p164_p2, %p163_p1 }
   0xa   :  { %137 = vmatmul.mubr.msk.bf16.vlgmr.msra.gmra.mrb[0].mxu0 %vm53_vm0, %v16_v5  ;;  %v26_v11 = vrot.slane %v21_v9, %v25_v8  ;;  %v30_v12 = vrot.slane %v21_v9, %v29_v10 }
   0xb   :  { %p166_p4 = pnand %p165_p3, %p159_p0 }
  0xdd   :  { %v91_v13 = vpop.f32.mrb[0].mxu0 }
  0xde   :  { %v92_v14 = vadd.f32 %v91_v13, %v26_v11  ;;  %v93_v15 = vpop.f32.mrb[1].mxu0 }
  0xdf   :  { %v94_v16 = vadd.f32 %v93_v15, %v30_v12  ;;  %v95_v17 = vpop.f32.mrb[2].mxu0 }
  0xe0   :  { %v138_v18 = vmul.f32 -1.442695, %v92_v14  ;;  %v96_v19 = vpop.f32.mrb[3].mxu0 }
  0xe1   :  { %v139_v20 = vmul.f32 -1.442695, %v94_v16 }
  0xe2   :  { %150 = vpow2.f32 %v138_v18 }
  0xe3   :  { %152 = vpow2.f32 %v139_v20 }
  0xec   :  { %v151_v21 = vpop.eup %150 }
  0xed   :  { %v153_v22 = vpop.eup %152  ;;  %v104_v23 = vadd.f32 1.0, %v151_v21 }
  0xee   :  { %v105_v24 = vadd.f32 1.0, %v153_v22 }
  0xef   :  { %154 = vrcp.f32 %v104_v23 }
  0xf0   :  { %156 = vrcp.f32 %v105_v24 }
  0xf9   :  { %v155_v25 = vpop.eup %154 }
  0xfa   :  { %v157_v26 = vpop.eup %156 }
  0xfb   :  { %v141_v27 = vpack.c.bf16 %v157_v26, %v155_v25 }
  0xfd   :  { %118 = vst [vmem:[#allocation2] sm:$0xff] %v141_v27 }
  0xfe   :  { %169 = shalt.err (!%p166_p4)
}
  0xff   :  { %s170_s26 = scalar_lea.hbm %s237_s3, 128 }
 0x100   :  { %p171_p5 = scmp.ne.s32.totalorder %s237_s3, %s170_s26  ;;  %p174_p6 = scmp.lt.u32.totalorder %s170_s26, %s237_s3 }
 0x102   :  { %p176_p7 = pnand %p174_p6, %p171_p5 }
 0x104   :  { %179 = shalt.err (!%p176_p7)
}
 0x105   :  { %128 = dma.vmem_to_hbm [thread:$0]  %s126_s1, 128, %s237_s3, [#allocation3]  }
 0x106   :  { %180 = dma.done.wait [#allocation3], 128  }
 0x107   :  { %181 = vsyncadd [#allocation3], 4294967168 }
 0x108   :  { %132 = vsyncpa [#allocation3], 1 }

// kernel: cdae_forward.2
= control target key start
LH: loop header
LB: loop body
LE: loop exit
PB: predicated region body
PF: predicated region fallthrough
CT: control target
= control target key end

     0   :  { %vm60_vm0 = vcmask 261120   ;;  %v169_v1 = vmov 0.0   ;;  %s211_s1 = inlined_call_operand.vmem [shape: bf16[32,256], index: 1, kind: input, shape index: {}]   ;;  %s212_s0 = inlined_call_operand.vmem [shape: bf16[8,256], index: 0, kind: input, shape index: {}]   ;;  %s213_s2 = inlined_call_operand.vmem [shape: f32[1,8,32], index: 2, kind: output, shape index: {}]  }
   0x1   :  { %v161_v0 = vld [vmem:[%s211_s1 + $0x4] ss:$8 sps:$4 sm:$0xff]   ;;  %61 = vst.msk [vmem:[%s213_s2] sm:$0xff] %vm60_vm0, %v169_v1  ;;  %v163_v2 = vld [vmem:[%s211_s1] ss:$8 sps:$4 sm:$0xff]  }
   0x2   :  { %95 = vmatprep.subr.bf16.mxu0 %v161_v0  ;;  %v164_v3 = vld [vmem:[%s211_s1 + $0x14] ss:$8 sps:$4 sm:$0xff]   ;;  %v63_v4 = vld [vmem:[%s212_s0] sm:$0xff]  ;;  %v166_v6 = vld [vmem:[%s211_s1 + $0x10] ss:$8 sps:$4 sm:$0xff]  }
   0x3   :  { %96 = vmatpush1.bf16.xpose.msra.mxu0 %v163_v2  ;;  %v155_v5 = vcombine.high %v63_v4, %v63_v4  ;;  %v154_v7 = vcombine.low %v63_v4, %v63_v4 }
   0x4   :  { %97 = vmatprep.subr.bf16.mxu0 %v164_v3 }
   0x5   :  { %127 = vmatprep.mubr.bf16.mxu0 %v155_v5 }
   0x8   :  { %v62_v8 = vld [vmem:[%s213_s2] sm:$0xff] }
   0xb   :  { %98 = vmatpush1.bf16.xpose.msra.mxu0 %v166_v6 }
  0x12   :  { %128 = vmatmul.mubr.bf16.vlgmr.msra.gmra.mrb[0].mxu0 %v154_v7 }
  0xe5   :  { %v129_v9 = vpop.f32.mrb[0].mxu0 }
  0xe6   :  { %v135_v10 = vadd.f32 %v129_v9, %v62_v8  ;;  %v131_v11 = vpop.f32.mrb[1].mxu0 }
  0xe7   :  { %v132_v12 = vpop.f32.mrb[2].mxu0 }
  0xe8   :  { %137 = vst.msk [vmem:[%s213_s2] sm:$0xff] %vm60_vm0, %v135_v10  ;;  %v133_v13 = vpop.f32.mrb[3].mxu0 }

</bundles_post_ra>
